<compile_context>
chip_gen: v5e
topology: v5e:2x2
jax: 0.10.0
libtpu: 0.0.40
codegen_flags: <defaults>
</compile_context>

<pallas_src>
import math

import jax
import jax.numpy as jnp
from jax.experimental import pallas as pl
from jax.experimental.pallas import tpu as pltpu


def _vmem_budgets():
    """(vmem_limit_bytes, tile_budget_bytes), generation dependent."""
    try:
        info = pltpu.get_tpu_info()
        phys = int(getattr(info, "vmem_capacity_bytes", 64 * 1024 * 1024))
    except Exception:
        phys = 64 * 1024 * 1024  # conservative: assume a 64 MiB (v7x-class) part
    if phys >= 100 * 1024 * 1024:            # v5e / v6e: 128 MiB VMEM
        return 100 * 1024 * 1024, 80 * 1024 * 1024
    return 48 * 1024 * 1024, 36 * 1024 * 1024  # v7x: 64 MiB VMEM per TensorCore


def _pick_row_tile(B, bytes_per_row, sublane, budget, cap=1024):
    """Largest power-of-two row tile whose working set (bytes_per_row already includes
    any double-buffer factors) fits `budget`; multiple of `sublane`, or exactly B."""
    tm = cap
    while tm > sublane and tm * bytes_per_row > budget:
        tm //= 2
    tm = max(tm, sublane)
    return B if B <= tm else tm


# ---------------------------------------------------------------------------
# Kernels.
# ---------------------------------------------------------------------------
def _gl_dot_kernel(x_ref, w_ref, o_ref):
    """No K-tiling: x (tm, ws) @ w (1, ws, tn) -> o (tm, tn)."""
    o_ref[...] = jnp.dot(
        x_ref[...], w_ref[0], preferred_element_type=jnp.float32
    ).astype(o_ref.dtype)


def _gl_kacc_inplace_kernel(x_ref, w_ref, o_ref):
    """K-tiled, f32 output: accumulate directly into the resident output block."""
    @pl.when(pl.program_id(3) == 0)
    def _():
        o_ref[...] = jnp.zeros_like(o_ref)

    o_ref[...] += jnp.dot(x_ref[...], w_ref[0], preferred_element_type=jnp.float32)


def _gl_kacc_scratch_kernel(x_ref, w_ref, o_ref, acc_ref):
    """K-tiled, non-f32 output: f32 VMEM scratch accumulator, cast once at the end."""
    @pl.when(pl.program_id(3) == 0)
    def _():
        acc_ref[...] = jnp.zeros_like(acc_ref)

    acc_ref[...] += jnp.dot(x_ref[...], w_ref[0], preferred_element_type=jnp.float32)

    @pl.when(pl.program_id(3) == pl.num_programs(3) - 1)
    def _():
        o_ref[...] = acc_ref[...].astype(o_ref.dtype)


def _gl_grouped_kernel(x_ref, w_ref, o_ref):
    """Group-major fallback: (1, tm, ws) @ (1, ws, hg) -> (1, tm, hg)."""
    o_ref[0] = jnp.dot(
        x_ref[0], w_ref[0], preferred_element_type=jnp.float32
    ).astype(o_ref.dtype)


# ---------------------------------------------------------------------------
# Column-slab matmul: x2 (B, G*ws) against w3 (G, ws, hg) -> (B, G*hg).
# Requires ws (resp. hg) to be a multiple of 128 or the full x2 (resp. out) width.
# ---------------------------------------------------------------------------
def _slab_matmul(x2, w3, out_dtype, *, tile_budget, vmem_limit, cost):
    G, ws, hg = w3.shape
    B = x2.shape[0]
    out_dim = G * hg
    itemsize = max(x2.dtype.itemsize, w3.dtype.itemsize)
    out_itemsize = jnp.dtype(out_dtype).itemsize
    sublane = 16 if itemsize <= 2 else 8
    cap = 2048 if tile_budget >= 64 * 1024 * 1024 else 1024

    # N (output-column) tiling only when hg is large and 128-aligned (v7x fit).
    tn = hg
    if hg > 1024 and hg % 128 == 0:
        for cand in (1024, 512, 256, 128):
            if hg % cand == 0:
                tn = cand
                break
    nt = hg // tn

    # Skip K-tiling whenever the double-buffered weight slab fits comfortably: the
    # weight block index is then constant across the (innermost) B-tile axis, so
    # Pallas fetches each group's weights from HBM exactly once.
    slab_bytes = 2 * ws * tn * itemsize
    k_tiled = (slab_bytes > tile_budget // 2) and (ws % 128 == 0)
    if k_tiled:
        tk = 128
        for cand in (512, 256, 128):      # prefer 256-multiples for 2x256x256 MXUs
            if cand < ws and ws % cand == 0:
                tk = cand
                break
    else:
        tk = ws
    kt = ws // tk

    acc_in_out = k_tiled and jnp.dtype(out_dtype) == jnp.dtype(jnp.float32)

    # Corrected double-buffer accounting: x and out blocks double-buffered, f32
    # accumulator (when present) is single-buffered scratch.
    per_row = 2 * tk * itemsize + 2 * tn * out_itemsize
    if k_tiled and not acc_in_out:
        per_row += tn * 4
    fixed = 2 * tk * tn * itemsize
    tm = _pick_row_tile(B, per_row, sublane, max(tile_budget - fixed, per_row), cap)
    bt = pl.cdiv(B, tm)

    out_shape = jax.ShapeDtypeStruct((B, out_dim), out_dtype)
    cparams = lambda sem: pltpu.CompilerParams(  # noqa: E731
        dimension_semantics=sem, vmem_limit_bytes=vmem_limit)

    if not k_tiled:
        grid = (G, nt, bt)  # groups leading (v7x megacore shards weight streaming)
        return pl.pallas_call(
            _gl_dot_kernel,
            out_shape=out_shape,
            grid_spec=pltpu.PrefetchScalarGridSpec(
                num_scalar_prefetch=0,
                grid=grid,
                in_specs=[
                    pl.BlockSpec((tm, ws), lambda g, n, i: (i, g)),
                    pl.BlockSpec((1, ws, tn), lambda g, n, i: (g, 0, n)),
                ],
                out_specs=pl.BlockSpec((tm, tn), lambda g, n, i: (i, g * nt + n)),
            ),
            compiler_params=cparams(("parallel", "parallel", "parallel")),
            cost_estimate=cost,
        )(x2, w3)

    grid = (G, nt, bt, kt)  # K innermost ("arbitrary"), output resident across K
    in_specs = [
        pl.BlockSpec((tm, tk), lambda g, n, i, k: (i, g * kt + k)),
        pl.BlockSpec((1, tk, tn), lambda g, n, i, k: (g, k, n)),
    ]
    out_specs = pl.BlockSpec((tm, tn), lambda g, n, i, k: (i, g * nt + n))
    kernel = _gl_kacc_inplace_kernel if acc_in_out else _gl_kacc_scratch_kernel
    scratch = [] if acc_in_out else [pltpu.VMEM((tm, tn), jnp.float32)]
    return pl.pallas_call(
        kernel,
        out_shape=out_shape,
        grid_spec=pltpu.PrefetchScalarGridSpec(
            num_scalar_prefetch=0,
            grid=grid,
            in_specs=in_specs,
            out_specs=out_specs,
            scratch_shapes=scratch,
        ),
        compiler_params=cparams(("parallel", "parallel", "parallel", "arbitrary")),
        cost_estimate=cost,
    )(x2, w3)


# ---------------------------------------------------------------------------
# Public entry point (== GroupedLinear.forward).
# ---------------------------------------------------------------------------
def grouped_linear(x, weight, *, _force_path=None, _tile_budget_bytes=None):
    """
    x      : (..., input_dim)
    weight : (groups, input_dim // groups, output_dim // groups)
    returns: (..., output_dim)
    """
    groups, ws, hg = weight.shape
    *lead, input_dim = x.shape
    assert input_dim == groups * ws, "input_dim mismatch"
    output_dim = groups * hg
    B = int(math.prod(lead)) if lead else 1

    x2 = x.reshape(B, input_dim)
    itemsize = max(x.dtype.itemsize, weight.dtype.itemsize)
    out_dtype = x.dtype

    vmem_limit, tile_budget = _vmem_budgets()
    if _tile_budget_bytes is not None:          # testing hook
        tile_budget = _tile_budget_bytes

    cost = pl.CostEstimate(
        flops=2 * groups * B * ws * hg,
        transcendentals=0,
        bytes_accessed=(
            B * input_dim * x.dtype.itemsize
            + groups * ws * hg * weight.dtype.itemsize
            + B * output_dim * jnp.dtype(out_dtype).itemsize
        ),
    )

    lane_dense = (ws % 128 == 0) and (hg % 128 == 0)
    blockdiag_ok = 2 * input_dim * output_dim * itemsize <= tile_budget // 2

    path = _force_path
    if path is None:
        path = "slab" if lane_dense else ("blockdiag" if blockdiag_ok else "grouped")

    if path == "slab":
        out2 = _slab_matmul(x2, weight, out_dtype,
                            tile_budget=tile_budget, vmem_limit=vmem_limit, cost=cost)
        return out2.reshape(*lead, output_dim)

    if path == "blockdiag":
        # Block-diagonal dense weight (input_dim, output_dim); one-time layout plumbing
        # in the wrapper, then a single lane-friendly dense matmul with G = 1.
        eye = jnp.eye(groups, dtype=weight.dtype)
        w_bd = (weight[:, None, :, :] * eye[:, :, None, None])   # (G, G, ws, hg)
        w_bd = w_bd.transpose(0, 2, 1, 3).reshape(1, input_dim, output_dim)
        out2 = _slab_matmul(x2, w_bd, out_dtype,
                            tile_budget=tile_budget, vmem_limit=vmem_limit, cost=cost)
        return out2.reshape(*lead, output_dim)

    # --- "grouped": group-major fallback (large, unaligned per-group widths). ---
    # TODO(synk): pack ceil(128/hg) groups per grid step into a lane-dense output slab
    # to avoid masked (<128-lane) stores on this path.
    sublane = 16 if itemsize <= 2 else 8
    cap = 2048 if tile_budget >= 64 * 1024 * 1024 else 1024
    x_g = x2.reshape(B, groups, ws).transpose(1, 0, 2)            # (G, B, ws)
    per_row = 2 * ws * itemsize + 2 * hg * jnp.dtype(out_dtype).itemsize
    fixed = 2 * ws * hg * itemsize
    tm = _pick_row_tile(B, per_row, sublane, max(tile_budget - fixed, per_row), cap)

    # B tiles innermost so each group's weight block is DMA'd once per group.
    grid = (groups, pl.cdiv(B, tm))
    out_g = pl.pallas_call(
        _gl_grouped_kernel,
        out_shape=jax.ShapeDtypeStruct((groups, B, hg), out_dtype),
        grid_spec=pltpu.PrefetchScalarGridSpec(
            num_scalar_prefetch=0,
            grid=grid,
            in_specs=[
                pl.BlockSpec((1, tm, ws), lambda g, i: (g, i, 0)),
                pl.BlockSpec((1, ws, hg), lambda g, i: (g, 0, 0)),
            ],
            out_specs=pl.BlockSpec((1, tm, hg), lambda g, i: (g, i, 0)),
        ),
        compiler_params=pltpu.CompilerParams(
            dimension_semantics=("parallel", "parallel"),
            vmem_limit_bytes=vmem_limit,
        ),
        cost_estimate=cost,
    )(x_g, weight)
    return out_g.transpose(1, 0, 2).reshape(*lead, output_dim)


def init_grouped_linear_weight(key, input_dim, output_dim, groups):
    """kaiming_uniform_(a=sqrt(5)) equivalent for a (groups, ws, hg) weight."""
    ws = input_dim // groups
    hg = output_dim // groups
    fan_in = ws * hg  # PyTorch fan_in for a 3-D tensor: size(1) * prod(size(2:))
    gain = math.sqrt(2.0 / (1.0 + 5.0))  # a = sqrt(5)
    bound = gain * math.sqrt(3.0 / fan_in)
    return jax.random.uniform(
        key, (groups, ws, hg), dtype=jnp.float32, minval=-bound, maxval=bound
    )


if __name__ == "__main__":
    key = jax.random.PRNGKey(0)
    ks = jax.random.split(key, 8)

    def reference(x, weight):
        groups, ws, hg = weight.shape
        *lead, _ = x.shape
        xg = x.reshape(*lead, groups, ws).astype(jnp.float32)
        out = jnp.einsum("...gi,gih->...gh", xg, weight.astype(jnp.float32))
        return out.reshape(*lead, groups * hg)

    batch, seq = 2, 8

    # Case 1: small, non-128-aligned per-group widths -> block-diagonal dense path.
    input_dim, output_dim, groups = 32, 32, 4
    x1 = jax.random.normal(ks[0], (batch, seq, input_dim), dtype=jnp.float32)
    w1 = init_grouped_linear_weight(ks[1], input_dim, output_dim, groups)
    out1 = jax.block_until_ready(grouped_linear(x1, w1))
    assert out1.shape == (batch, seq, output_dim)
    assert jnp.allclose(out1, reference(x1, w1), atol=1e-2, rtol=1e-2)

    # Case 1b: same shapes via the forced group-major fallback kernel.
    out1b = jax.block_until_ready(grouped_linear(x1, w1, _force_path="grouped"))
    assert jnp.allclose(out1b, reference(x1, w1), atol=1e-2, rtol=1e-2)

    # Case 2: 128-aligned per-group widths -> lane-dense slab path, no K-tiling
    # (per-group weight slab fits VMEM and is fetched from HBM once per group).
    input_dim, output_dim, groups = 256, 256, 2
    x2 = jax.random.normal(ks[2], (batch, seq, input_dim), dtype=jnp.float32)
    w2 = init_grouped_linear_weight(ks[3], input_dim, output_dim, groups)
    out2 = jax.block_until_ready(grouped_linear(x2, w2))
    assert out2.shape == (batch, seq, output_dim)
    assert jnp.allclose(out2, reference(x2, w2), atol=1e-2, rtol=1e-2)

    # Case 3: force K-tiling via a tiny tile budget, f32 output -> accumulation
    # directly into the resident output block (no scratch).
    input_dim, output_dim, groups = 512, 256, 2
    x3 = jax.random.normal(ks[4], (batch, seq, input_dim), dtype=jnp.float32)
    w3 = init_grouped_linear_weight(ks[5], input_dim, output_dim, groups)
    out3 = jax.block_until_ready(grouped_linear(x3, w3, _tile_budget_bytes=300 * 1024))
    assert out3.shape == (batch, seq, output_dim)
    assert jnp.allclose(out3, reference(x3, w3), atol=1e-2, rtol=1e-2)

    # Case 4: same, bf16 in/out -> K-tiled path with the f32 VMEM scratch accumulator.
    x4 = x3.astype(jnp.bfloat16)
    w4 = w3.astype(jnp.bfloat16)
    out4 = jax.block_until_ready(grouped_linear(x4, w4, _tile_budget_bytes=200 * 1024))
    assert out4.dtype == jnp.bfloat16
    assert jnp.allclose(out4.astype(jnp.float32), reference(x4, w4), atol=2e-2, rtol=2e-2)

    print("KERNEL_OK")
</pallas_src>

<mosaic_0001>
module attributes {stable_mosaic.version = 11 : i64} {
  func.func @_gl_dot_kernel(%arg0: i32, %arg1: i32, %arg2: i32, %arg3: memref<16x32xf32, #tpu.memory_space<vmem>>, %arg4: memref<1x32x32xf32, #tpu.memory_space<vmem>>, %arg5: memref<16x32xf32, #tpu.memory_space<vmem>>) attributes {dimension_semantics = [#tpu.dimension_semantics<parallel>, #tpu.dimension_semantics<parallel>, #tpu.dimension_semantics<parallel>], iteration_bounds = array<i64: 1, 1, 1>, scalar_prefetch = 0 : i64, scratch_operands = 0 : i64, tpu.core_type = #tpu.core_type<tc>, window_params = [{transform_indices = @transform_0, window_bounds = array<i64: 16, 32>}, {transform_indices = @transform_1, window_bounds = array<i64: 1, 32, 32>}, {transform_indices = @transform_2, window_bounds = array<i64: 16, 32>}]} {
    %c0 = arith.constant 0 : index
    %c0_0 = arith.constant 0 : index
    %0 = vector.load %arg3[%c0, %c0_0] : memref<16x32xf32, #tpu.memory_space<vmem>>, vector<16x32xf32>
    %c0_1 = arith.constant 0 : index
    %c0_2 = arith.constant 0 : index
    %c0_3 = arith.constant 0 : index
    %1 = vector.load %arg4[%c0_1, %c0_2, %c0_3] : memref<1x32x32xf32, #tpu.memory_space<vmem>>, vector<1x32x32xf32>
    %2 = vector.shape_cast %1 : vector<1x32x32xf32> to vector<32x32xf32>
    %cst = arith.constant dense<0.000000e+00> : vector<16x32xf32>
    %3 = tpu.matmul %0, %2, %cst {dimension_numbers = #tpu.dot_dimension_numbers<[1], [0], [0], [1], [0, 0, 1, 1], [], []>} : vector<16x32xf32>, vector<32x32xf32>, vector<16x32xf32> -> vector<16x32xf32>
    %c0_4 = arith.constant 0 : index
    %c0_5 = arith.constant 0 : index
    %4 = vector.load %arg5[%c0_4, %c0_5] : memref<16x32xf32, #tpu.memory_space<vmem>>, vector<16x32xf32>
    tpu.vector_store %arg5[%c0_4, %c0_5], %3 {strides = array<i32>} : memref<16x32xf32, #tpu.memory_space<vmem>>, vector<16x32xf32>,
    return
  }
  func.func @transform_0(%arg0: i32, %arg1: i32, %arg2: i32) -> (i32, i32) {
    %c0_i32 = arith.constant 0 : i32
    return %arg2, %arg0 : i32, i32
  }
  func.func @transform_1(%arg0: i32, %arg1: i32, %arg2: i32) -> (i32, i32, i32) {
    %c0_i32 = arith.constant 0 : i32
    %c0_i32_0 = arith.constant 0 : i32
    return %arg0, %c0_i32, %arg1 : i32, i32, i32
  }
  func.func @transform_2(%arg0: i32, %arg1: i32, %arg2: i32) -> (i32, i32) {
    %c1_i32 = arith.constant 1 : i32
    %0 = arith.muli %arg0, %c1_i32 : i32
    %1 = arith.addi %0, %arg1 : i32
    %c0_i32 = arith.constant 0 : i32
    return %arg2, %1 : i32, i32
  }
}

</mosaic_0001>

<bundles_post_ra>
// kernel: tpu_custom_call.1
= control target key start
LH: loop header
LB: loop body
LE: loop exit
PB: predicated region body
PF: predicated region fallthrough
CT: control target
= control target key end

     0   :  { %7 = vsyncpa [#allocation3], 0  ;;  %s233_s0 = inlined_call_operand.hbm [shape: f32[16,32], index: 0, kind: input, shape index: {}]   ;;  %s234_s1 = inlined_call_operand.hbm [shape: f32[1,32,32], index: 1, kind: input, shape index: {}]   ;;  %s235_s2 = inlined_call_operand.hbm [shape: f32[16,32], index: 2, kind: output, shape index: {}]  }
   0x1   :  { %8 = vsyncpa [#allocation6], 0 }
   0x2   :  { %9 = vsyncpa [#allocation4], 0  ;;  %s14_s11 = sshll.u32 %s233_s0, 4  ;;  %s195_s12 = smov [#allocation2]   ;;  %s15_s11 = int_to_ptr.hbm [resolvable:$true] %s14_s11 }
   0x3   :  { %s16_s13 = sshll.u32 %s195_s12, 4  ;;  %s27_s16 = sshll.u32 %s234_s1, 4  ;;  %s17_s13 = int_to_ptr.vmem [resolvable:$true] %s16_s13  ;;  %s28_s16 = int_to_ptr.hbm [resolvable:$true] %s27_s16 }
   0x4   :  { %s196_s17 = smov 128   ;;  %s197_s18 = smov 8  }
   0x5   :  { %22 = dma.hbm_to_vmem [thread:$0]  %s15_s11, 256, %s17_s13, [#allocation3], %s196_s17, %s196_s17, %s197_s18  }
   0x6   :  { %s198_s19 = smov [#allocation5]  }
   0x7   :  { %s29_s20 = sshll.u32 %s198_s19, 4  ;;  %s30_s20 = int_to_ptr.vmem [resolvable:$true] %s29_s20 }
   0x8   :  { %35 = dma.hbm_to_vmem [thread:$0]  %s28_s16, 512, %s30_s20, [#allocation6], %s196_s17, %s196_s17, %s197_s18  }
   0x9   :  { %189 = dma.done.wait [#allocation3], 256  }
   0xa   :  { %190 = vsyncadd [#allocation3], 4294967040 }
   0xb   :  { %191 = dma.done.wait [#allocation6], 512  }
   0xc   :  { %192 = vsyncadd [#allocation6], 4294966784  ;;  %v50_v0 = vld [vmem:[#allocation5 + $0x18] sm:$0xff]  ;;  %v49_v1 = vld [vmem:[#allocation5 + $0x10] sm:$0xff]  ;;  %vm51_vm0 = vcmask 261120   ;;  %s199_s0 = smov [#allocation7]  }
   0xd   :  { %70 = vmatpush.msra.mxu0 %v50_v0  ;;  %108 = vmatpush.msra.mxu1 %v50_v0  ;;  %v48_v2 = vld [vmem:[#allocation5 + $0x8] sm:$0xff]  ;;  %v47_v3 = vld [vmem:[#allocation5] sm:$0xff]  ;;  %v45_v4 = vld [vmem:[#allocation2] sm:$0xff]  ;;  %s90_s1 = sshll.u32 %s199_s0, 4  ;;  %s92_s23 = sshll.u32 %s235_s2, 4  ;;  %s91_s1 = int_to_ptr.vmem [resolvable:$true] %s90_s1  ;;  %s93_s23 = int_to_ptr.hbm [resolvable:$true] %s92_s23 }
   0xe   :  { %v46_v5 = vld [vmem:[#allocation2 + $0x8] sm:$0xff] }
   0xf   :  { %71 = vmatpush.msra.mxu0 %v49_v1  ;;  %109 = vmatpush.msra.mxu1 %v49_v1 }
  0x11   :  { %72 = vmatpush.msra.mxu0 %v48_v2  ;;  %110 = vmatpush.msra.mxu1 %v48_v2 }
  0x13   :  { %73 = vmatpush.msra.mxu0 %v47_v3  ;;  %111 = vmatpush.msra.mxu1 %v47_v3 }
  0x14   :  { %106 = vmatmul.msk.f32.vlgmr.msra.gmra.mxu0 %vm51_vm0, %v45_v4  ;;  %107 = vmatmul.msk.f32.vlgmr.msra.gmra.mxu1 %vm51_vm0, %v46_v5 }
  0x91   :  { %v75_v6 = vpop.f32.mrf.mxu0  ;;  %v78_v7 = vpop.f32.mrf.mxu1 }
  0x92   :  { %81 = vst.msk [vmem:[#allocation7] sm:$0xff] %vm51_vm0, %v75_v6 }
  0x93   :  { %82 = vst.msk [vmem:[#allocation7 + $0x8] sm:$0xff] %vm51_vm0, %v78_v7 }
  0x94   :  { %98 = dma.vmem_to_hbm [thread:$0]  %s91_s1, 256, %s93_s23, [#allocation4], %s196_s17, %s196_s17, %s197_s18  }
  0x95   :  { %193 = dma.done.wait [#allocation4], 256  }
  0x96   :  { %194 = vsyncadd [#allocation4], 4294967040 }
  0x97   :  { %103 = vsyncpa [#allocation3], 1 }
  0x98   :  { %104 = vsyncpa [#allocation6], 1 }
  0x99   :  { %105 = vsyncpa [#allocation4], 1 }

</bundles_post_ra>
